<compile_context>
chip_gen: v7x
topology: tpu7x:2x2x1
jax: 0.10.0
libtpu: 0.0.40
codegen_flags: <defaults>
</compile_context>

<pallas_src>
import random
from functools import partial

import jax
import jax.numpy as jnp
from jax.experimental import pallas as pl
from jax.experimental.pallas import tpu as pltpu


# ---------------------------------------------------------------------------
# Kernel
# ---------------------------------------------------------------------------
def _jitter_kernel(shifts_ref, x_ref, o_ref):
    # shifts_ref : SMEM int32[2] -> (h_shift mod H, w_shift mod W)
    # x_ref/o_ref: VMEM (tile_planes, H, W) slab of independent H x W planes.
    h_shift = shifts_ref[0]
    w_shift = shifts_ref[1]
    # Both rolls are XLU rotations (sublane for H, lane for W); single fused
    # load -> roll -> roll -> store expression, no full-tile temporary.
    o_ref[...] = pltpu.roll(
        pltpu.roll(x_ref[...], h_shift, axis=1), w_shift, axis=2)


# ---------------------------------------------------------------------------
# Tiling helpers
# ---------------------------------------------------------------------------
def _vmem_capacity_bytes():
    """Per-core VMEM capacity; conservative fallback if the query fails."""
    try:
        return int(pltpu.get_tpu_info().vmem_capacity_bytes)
    except Exception:
        return 64 << 20  # v7x per-TensorCore physical VMEM (smallest gen)


# ---------------------------------------------------------------------------
# Forward
# ---------------------------------------------------------------------------
@partial(jax.jit, static_argnames=("donate", "tile_planes"))
def _jitter_impl(x, shifts, donate=False, tile_planes=None):
    """roll(roll(x, h_shift, 2), w_shift, 3) for NCHW `x`; shifts=int32[2]."""
    N, C, H, W = x.shape
    orig_dtype = x.dtype

    # TODO(synk): dynamic sublane (H) roll on packed sub-32-bit dtypes is
    # unvalidated; upcast to a 32-bit container (exact for a pure permutation).
    work = x
    if jnp.dtype(orig_dtype).itemsize < 4:
        wide = jnp.int32 if jnp.issubdtype(orig_dtype, jnp.integer) else jnp.float32
        work = x.astype(wide)

    itemsize = jnp.dtype(work.dtype).itemsize
    plane_bytes = H * W * itemsize
    nc = N * C

    # Canonicalize (possibly negative) shifts into [0, dim).
    shifts = jnp.stack([shifts[0] % H, shifts[1] % W]).astype(jnp.int32)

    vmem_cap = _vmem_capacity_bytes()
    # ~2-4 MiB blocks: pipeliner double-buffers input AND output (~4x block
    # resident), so this stays well under the scoped limit on every gen while
    # amortizing the ~0.35us per-grid-step overhead even at v7x's 3.2 TB/s.
    target_bytes = int(min(4 << 20, max(1 << 20, vmem_cap // 16)))

    if tile_planes is None:
        tile_planes = max(1, target_bytes // plane_bytes)
    tile_planes = int(min(int(tile_planes), nc))

    block_bytes = tile_planes * plane_bytes
    vmem_needed = 4 * block_bytes + (2 << 20)
    if vmem_needed > vmem_cap:
        # TODO(synk): H-tiled Pallas path (wrap handled via a scalar-prefetch
        # shifted index_map) for planes too large to double-buffer in VMEM;
        # until then fall back to XLA roll rather than VMEM-OOM the compile.
        out = jnp.roll(jnp.roll(work, shifts[0], axis=2), shifts[1], axis=3)
        return out.astype(orig_dtype)

    # Merge N and C: the roll only touches H/W, so this is pure layout
    # plumbing and lets one tile span batch/channel boundaries.
    xf = work.reshape(nc, H, W)
    grid = (pl.cdiv(nc, tile_planes),)   # non-divisor tiles OK (masked edge)

    # TODO(synk): W % 128 != 0 (e.g. 224/56/14) produces masked vst.msk
    # stores; a channels-last (lane-dense) layout would be faster there but
    # is out of scope for this NCHW module.
    out = pl.pallas_call(
        _jitter_kernel,
        out_shape=jax.ShapeDtypeStruct((nc, H, W), work.dtype),
        grid=grid,
        in_specs=[
            pl.BlockSpec(memory_space=pltpu.MemorySpace.SMEM),        # shifts
            pl.BlockSpec((tile_planes, H, W), lambda i: (i, 0, 0)),   # planes
        ],
        out_specs=pl.BlockSpec((tile_planes, H, W), lambda i: (i, 0, 0)),
        compiler_params=pltpu.CompilerParams(
            # Every plane-slab is independent -> megacore (v7x, 2 TCs) shards
            # the grid; harmless on single-TC v5e/v6e.
            dimension_semantics=("parallel",),
            vmem_limit_bytes=int(min(vmem_cap, max(32 << 20, vmem_needed))),
        ),
        input_output_aliases=({1: 0} if donate else {}),
    )(shifts, xf)

    return out.reshape(N, C, H, W).astype(orig_dtype)


def jitter_forward(x, h_shift: int, w_shift: int, donate: bool = False):
    """Equivalent of torch.roll(torch.roll(x, h_shift, 2), w_shift, 3)."""
    shifts = jnp.asarray([h_shift, w_shift], dtype=jnp.int32)  # runtime scalars
    return _jitter_impl(x, shifts, donate=donate, tile_planes=None)


class Jitter:
    """Thin wrapper mirroring the PyTorch module's interface."""

    def __init__(self, jitter_val: int):
        self.jitter_val = jitter_val

    def __call__(self, x):
        h_shift = random.randint(-self.jitter_val, self.jitter_val)
        w_shift = random.randint(-self.jitter_val, self.jitter_val)
        return jitter_forward(x, h_shift, w_shift)


if __name__ == "__main__":
    key = jax.random.PRNGKey(0)
    ok = True

    # Small NCHW input; H multiple of 8 (sublane) and W multiple of 128
    # (lane) so loads/stores are unmasked and the rolls are vreg rotations.
    x = jax.random.normal(key, (2, 4, 16, 128), dtype=jnp.float32)

    # Explicit shift cases: positive / negative / zero on both axes, and
    # shift == dim (canonicalizes to 0).  Bit-exact permutation check.
    for h_shift, w_shift in [
        (3, -2), (-3, 3), (0, 5), (7, 0), (0, 0), (16, 128), (-16, -1),
    ]:
        out = jitter_forward(x, h_shift, w_shift)
        jax.block_until_ready(out)
        ref = jnp.roll(jnp.roll(x, h_shift, axis=2), w_shift, axis=3)
        ok = ok and out.shape == x.shape and out.dtype == x.dtype
        ok = ok and bool(jnp.array_equal(out, ref))

    # Force a non-divisor tile (NC=8, tile=3) to exercise the cdiv /
    # partial-last-block path.
    out_p = _jitter_impl(x, jnp.asarray([5, -7], jnp.int32), tile_planes=3)
    jax.block_until_ready(out_p)
    ref_p = jnp.roll(jnp.roll(x, 5, axis=2), -7, axis=3)
    ok = ok and bool(jnp.array_equal(out_p, ref_p))

    # Prime-ish channel count (C=3) exercising the flattened NC axis, plus a
    # larger W.
    x2 = jax.random.normal(jax.random.PRNGKey(1), (2, 3, 32, 256),
                           dtype=jnp.float32)
    out2 = jitter_forward(x2, -5, 9)
    jax.block_until_ready(out2)
    ref2 = jnp.roll(jnp.roll(x2, -5, axis=2), 9, axis=3)
    ok = ok and bool(jnp.array_equal(out2, ref2))

    # bf16 input goes through the exact 32-bit upcast fallback.
    x3 = jax.random.normal(jax.random.PRNGKey(2), (2, 3, 16, 128),
                           dtype=jnp.float32).astype(jnp.bfloat16)
    out3 = jitter_forward(x3, 2, -3)
    jax.block_until_ready(out3)
    ref3 = jnp.roll(jnp.roll(x3, 2, axis=2), -3, axis=3)
    ok = ok and out3.dtype == jnp.bfloat16
    ok = ok and bool(jnp.array_equal(out3, ref3))

    # Module-style call with host-side randomness (as the PyTorch module).
    random.seed(0)
    mod = Jitter(jitter_val=3)
    out4 = mod(x)
    jax.block_until_ready(out4)
    ok = ok and out4.shape == x.shape and out4.dtype == x.dtype

    assert ok
    print("KERNEL_OK")
</pallas_src>

<mosaic_0001>
module attributes {stable_mosaic.version = 11 : i64} {
  func.func @_jitter_kernel(%arg0: i32, %arg1: memref<2xi32, #tpu.memory_space<smem>>, %arg2: memref<8x16x128xf32, #tpu.memory_space<vmem>>, %arg3: memref<8x16x128xf32, #tpu.memory_space<vmem>>) attributes {dimension_semantics = [#tpu.dimension_semantics<parallel>], iteration_bounds = array<i64: 1>, scalar_prefetch = 0 : i64, scratch_operands = 0 : i64, tpu.core_type = #tpu.core_type<tc>, window_params = [{transform_indices = @transform_0, window_bounds = array<i64: 2>}, {transform_indices = @transform_1, window_bounds = array<i64: 8, 16, 128>}, {transform_indices = @transform_2, window_bounds = array<i64: 8, 16, 128>}]} {
    %c0 = arith.constant 0 : index
    %0 = memref.load %arg1[%c0] : memref<2xi32, #tpu.memory_space<smem>>
    %c1 = arith.constant 1 : index
    %1 = memref.load %arg1[%c1] : memref<2xi32, #tpu.memory_space<smem>>
    %c0_0 = arith.constant 0 : index
    %c0_1 = arith.constant 0 : index
    %c0_2 = arith.constant 0 : index
    %2 = vector.load %arg2[%c0_0, %c0_1, %c0_2] : memref<8x16x128xf32, #tpu.memory_space<vmem>>, vector<8x16x128xf32>
    %3 = tpu.dynamic_rotate %2 by %0 dim 1 : vector<8x16x128xf32>, i32 -> vector<8x16x128xf32>
    %4 = tpu.dynamic_rotate %3 by %1 dim 2 : vector<8x16x128xf32>, i32 -> vector<8x16x128xf32>
    %c0_3 = arith.constant 0 : index
    %c0_4 = arith.constant 0 : index
    %c0_5 = arith.constant 0 : index
    %5 = vector.load %arg3[%c0_3, %c0_4, %c0_5] : memref<8x16x128xf32, #tpu.memory_space<vmem>>, vector<8x16x128xf32>
    tpu.vector_store %arg3[%c0_3, %c0_4, %c0_5], %4 {strides = array<i32>} : memref<8x16x128xf32, #tpu.memory_space<vmem>>, vector<8x16x128xf32>,
    return
  }
  func.func @transform_0(%arg0: i32) -> i32 {
    %c0_i32 = arith.constant 0 : i32
    %c0_i32_0 = arith.constant 0 : i32
    return %c0_i32 : i32
  }
  func.func @transform_1(%arg0: i32) -> (i32, i32, i32) {
    %c0_i32 = arith.constant 0 : i32
    %c0_i32_0 = arith.constant 0 : i32
    %c0_i32_1 = arith.constant 0 : i32
    return %arg0, %c0_i32, %c0_i32_0 : i32, i32, i32
  }
  func.func @transform_2(%arg0: i32) -> (i32, i32, i32) {
    %c0_i32 = arith.constant 0 : i32
    %c0_i32_0 = arith.constant 0 : i32
    %c0_i32_1 = arith.constant 0 : i32
    return %arg0, %c0_i32, %c0_i32_0 : i32, i32, i32
  }
}

</mosaic_0001>

<bundles_post_ra>
// kernel: _jitter_impl.1
= control target key start
LH: loop header
LB: loop body
LE: loop exit
PB: predicated region body
PF: predicated region fallthrough
CT: control target
= control target key end

     0   :  { %7 = vsyncpa [#allocation5], 0  ;;  %s428_s0 = inlined_call_operand.vmem [shape: s32[2], index: 0, kind: input, shape index: {}]   ;;  %s429_s1 = inlined_call_operand.hbm [shape: f32[8,16,128], index: 1, kind: input, shape index: {}]   ;;  %s430_s2 = inlined_call_operand.hbm [shape: f32[8,16,128], index: 2, kind: output, shape index: {}]  }
   0x1   :  { %8 = vsyncpa [#allocation3], 0 }
   0x2   :  { %9 = vsyncpa [#allocation4], 0  ;;  %s16_s11 = sshll.u32 %s428_s0, 4  ;;  %s17_s11 = int_to_ptr.vmem [resolvable:$true] %s16_s11 }
   0x3   :  { %s206_s12 = scalar_lea.vmem %s17_s11, 16  ;;  %p211_p1 = scmp.lt.s32.totalorder %s17_s11, %s17_s11 }
   0x4   :  { %p207_p0 = scmp.ne.s32.totalorder %s17_s11, %s206_s12  ;;  %p212_p2 = scmp.lt.s32.totalorder %s206_s12, %s206_s12 }
   0x6   :  { %p213_p3 = por %p212_p2, %p211_p1 }
   0x8   :  { %p214_p4 = pnand %p213_p3, %p207_p0 }
   0xa   :  { %217 = shalt.err (!%p214_p4)
}
   0xb   :  { %s268_s13 = smov [#allocation2]   ;;  %s269_s14 = smov [#allocation6]  }
   0xc   :  { %19 = dma.vmem_to_smem %s17_s11, 16, %s268_s13, [#allocation5]  }
   0xd   :  { %s25_s15 = sshll.u32 %s269_s14, 4  ;;  %s218_s18 = scalar_lea.hbm %s429_s1, 2048  ;;  %s26_s15 = int_to_ptr.vmem [resolvable:$true] %s25_s15 }
   0xe   :  { %p219_p5 = scmp.ne.s32.totalorder %s429_s1, %s218_s18  ;;  %p222_p6 = scmp.lt.u32.totalorder %s218_s18, %s429_s1 }
  0x10   :  { %p224_p7 = pnand %p222_p6, %p219_p5 }
  0x12   :  { %227 = shalt.err (!%p224_p7)
}
  0x13   :  { %s228_s22 = scalar_lea.vmem %s26_s15, 2048  ;;  %p233_p9 = scmp.lt.s32.totalorder %s26_s15, %s26_s15 }
  0x14   :  { %p229_p8 = scmp.ne.s32.totalorder %s26_s15, %s228_s22  ;;  %p234_p10 = scmp.lt.s32.totalorder %s228_s22, %s228_s22 }
  0x16   :  { %p235_p11 = por %p234_p10, %p233_p9 }
  0x18   :  { %p236_p12 = pnand %p235_p11, %p229_p8 }
  0x1a   :  { %239 = shalt.err (!%p236_p12)
}
  0x1b   :  { %s270_s23 = smov 128   ;;  %s271_s24 = smov 8  }
  0x1c   :  { %31 = dma.hbm_to_vmem [thread:$0]  %s429_s1, 2048, %s26_s15, [#allocation3], %s270_s23, %s270_s23, %s271_s24  }
  0x1d   :  { %262 = dma.done.wait [#allocation5], 16  }
  0x1e   :  { %263 = vsyncadd [#allocation5], 4294967280 }
  0x1f   :  { %264 = dma.done.wait [#allocation3], 2048  }
  0x20   :  { %265 = vsyncadd [#allocation3], 4294965248 }
  0x21   :  { %38 = sfence }
  0x22   :  { %s39_s27 = sld [smem:[#allocation2]]  ;;  %v94_v0 = vlaneseq  ;;  %s200_s28 = sld [smem:[#allocation2 + $0x1]]  ;;  %v43_v2 = vld [vmem:[#allocation6 + $0x10] sm:$0xff]  ;;  %v44_v3 = vld [vmem:[#allocation6 + $0x18] sm:$0xff]  ;;  %v41_v4 = vld [vmem:[#allocation6] sm:$0xff] }
  0x23   :  { %v42_v6 = vld [vmem:[#allocation6 + $0x8] sm:$0xff]  ;;  %v45_v10 = vld [vmem:[#allocation6 + $0x20] sm:$0xff]  ;;  %v47_v20 = vld [vmem:[#allocation6 + $0x30] sm:$0xff]  ;;  %s272_s6 = smov [#allocation7]  }
  0x24   :  { %v95_v1 = vshrl.u32 %v94_v0, 7  ;;  %v46_v11 = vld [vmem:[#allocation6 + $0x28] sm:$0xff]  ;;  %v48_v24 = vld [vmem:[#allocation6 + $0x38] sm:$0xff]  ;;  %v49_v32 = vld [vmem:[#allocation6 + $0x40] sm:$0xff]  ;;  %s187_s7 = sshll.u32 %s272_s6, 4  ;;  %s188_s7 = int_to_ptr.vmem [resolvable:$true] %s187_s7 }
  0x25   :  { %v50_v33 = vld [vmem:[#allocation6 + $0x48] sm:$0xff]  ;;  %v51_v40 = vld [vmem:[#allocation6 + $0x50] sm:$0xff]  ;;  %v52_v41 = vld [vmem:[#allocation6 + $0x58] sm:$0xff]  ;;  %s240_s8 = scalar_lea.vmem %s188_s7, 2048  ;;  %p245_p0 = scmp.lt.s32.totalorder %s188_s7, %s188_s7 }
  0x26   :  { %v53_v48 = vld [vmem:[#allocation6 + $0x60] sm:$0xff]  ;;  %v54_v49 = vld [vmem:[#allocation6 + $0x68] sm:$0xff]  ;;  %v55_v56 = vld [vmem:[#allocation6 + $0x70] sm:$0xff]  ;;  %p241_p13 = scmp.ne.s32.totalorder %s188_s7, %s240_s8  ;;  %p246_p1 = scmp.lt.s32.totalorder %s240_s8, %s240_s8 }
  0x27   :  { %v56_v57 = vld [vmem:[#allocation6 + $0x78] sm:$0xff] }
  0x28   :  { %s57_s29 = sand.u32 15, %s39_s27   ;;  %s318_s1 = sand.u32 127, %s200_s28  }
  0x29   :  { %s58_s30 = sand.u32 7, %s57_s29   ;;  %s59_s3 = sshrl.u32 %s57_s29, 3 }
  0x2a   :  { %s60_s4 = ssub.s32 8, %s58_s30  ;;  %v93_v5 = vstv %s58_s30  ;;  %s113_s5 = sand.u32 1, %s59_s3 }
  0x2b   :  { %v306_v7 = vstv %s60_s4  ;;  %vm308_vm0 = vcmp.lt.s32.totalorder %v95_v1, %v93_v5  ;;  %v312_v9 = vstv %s113_s5  ;;  %p247_p2 = por %p246_p1, %p245_p0 }
  0x2c   :  { %v64_v12 = vrot.slane %v43_v2, %v306_v7  ;;  %v80_v13 = vrot.slane %v44_v3, %v306_v7  ;;  %vm115_vm1 = vcmp.ne.s32.totalorder %v312_v9, 0  ;;  %v62_v14 = vrot.slane %v41_v4, %v306_v7 }
  0x2d   :  { %v78_v15 = vrot.slane %v42_v6, %v306_v7  ;;  %v66_v18 = vrot.slane %v45_v10, %v306_v7  ;;  %v82_v19 = vrot.slane %v46_v11, %v306_v7  ;;  %v68_v27 = vrot.slane %v47_v20, %v306_v7  ;;  %p248_p3 = pnand %p247_p2, %p241_p13 }
  0x2e   :  { %v98_v16 = vsel %vm308_vm0, %v64_v12, %v80_v13  ;;  %v106_v17 = vsel %vm308_vm0, %v80_v13, %v64_v12  ;;  %v84_v31 = vrot.slane %v48_v24, %v306_v7  ;;  %v70_v35 = vrot.slane %v49_v32, %v306_v7 }
  0x2f   :  { %v118_v21 = vsel %vm115_vm1, %v98_v16, %v106_v17  ;;  %v97_v22 = vsel %vm308_vm0, %v62_v14, %v78_v15  ;;  %v105_v23 = vsel %vm308_vm0, %v78_v15, %v62_v14  ;;  %v119_v26 = vsel %vm115_vm1, %v106_v17, %v98_v16 }
  0x30   :  { %138 = vrot.lane.b32.xlu1 %v118_v21, %s318_s1  ;;  %v116_v25 = vsel %vm115_vm1, %v97_v22, %v105_v23  ;;  %v117_v28 = vsel %vm115_vm1, %v105_v23, %v97_v22  ;;  %v99_v29 = vsel %vm308_vm0, %v66_v18, %v82_v19  ;;  %v107_v30 = vsel %vm308_vm0, %v82_v19, %v66_v18 }
  0x31   :  { %134 = vrot.lane.b32.xlu0 %v116_v25, %s318_s1  ;;  %v121_v34 = vsel %vm115_vm1, %v107_v30, %v99_v29  ;;  %v120_v36 = vsel %vm115_vm1, %v99_v29, %v107_v30  ;;  %v100_v37 = vsel %vm308_vm0, %v68_v27, %v84_v31  ;;  %v108_v38 = vsel %vm308_vm0, %v84_v31, %v68_v27 }
  0x32   :  { %v86_v39 = vrot.slane %v50_v33, %v306_v7  ;;  %v123_v42 = vsel %vm115_vm1, %v108_v38, %v100_v37  ;;  %v122_v43 = vsel %vm115_vm1, %v100_v37, %v108_v38  ;;  %v72_v46 = vrot.slane %v51_v40, %v306_v7 }
  0x33   :  { %v88_v47 = vrot.slane %v52_v41, %v306_v7  ;;  %v74_v51 = vrot.slane %v53_v48, %v306_v7  ;;  %v90_v55 = vrot.slane %v54_v49, %v306_v7  ;;  %v76_v59 = vrot.slane %v55_v56, %v306_v7 }
  0x34   :  { %140 = vrot.lane.b32.xlu1 %v119_v26, %s318_s1  ;;  %v101_v44 = vsel %vm308_vm0, %v70_v35, %v86_v39  ;;  %v109_v45 = vsel %vm308_vm0, %v86_v39, %v70_v35  ;;  %v92_v63 = vrot.slane %v56_v57, %v306_v7 }
  0x35   :  { %136 = vrot.lane.b32.xlu0 %v117_v28, %s318_s1  ;;  %v125_v50 = vsel %vm115_vm1, %v109_v45, %v101_v44  ;;  %v124_v52 = vsel %vm115_vm1, %v101_v44, %v109_v45  ;;  %v102_v53 = vsel %vm308_vm0, %v72_v46, %v88_v47  ;;  %v110_v54 = vsel %vm308_vm0, %v88_v47, %v72_v46 }
  0x36   :  { %v127_v58 = vsel %vm115_vm1, %v110_v54, %v102_v53  ;;  %v126_v60 = vsel %vm115_vm1, %v102_v53, %v110_v54  ;;  %v103_v61 = vsel %vm308_vm0, %v74_v51, %v90_v55  ;;  %v111_v62 = vsel %vm308_vm0, %v90_v55, %v74_v51 }
  0x37   :  { %v129_v0 = vsel %vm115_vm1, %v111_v62, %v103_v61  ;;  %v128_v1 = vsel %vm115_vm1, %v103_v61, %v111_v62  ;;  %v104_v2 = vsel %vm308_vm0, %v76_v59, %v92_v63  ;;  %v112_v3 = vsel %vm308_vm0, %v92_v63, %v76_v59 }
  0x38   :  { %144 = vrot.lane.b32.xlu1 %v121_v34, %s318_s1  ;;  %v131_v4 = vsel %vm115_vm1, %v112_v3, %v104_v2  ;;  %v130_v5 = vsel %vm115_vm1, %v104_v2, %v112_v3 }
  0x39   :  { %142 = vrot.lane.b32.xlu0 %v120_v36, %s318_s1 }
  0x3c   :  { %148 = vrot.lane.b32.xlu1 %v123_v42, %s318_s1 }
  0x3d   :  { %146 = vrot.lane.b32.xlu0 %v122_v43, %s318_s1 }
  0x40   :  { %152 = vrot.lane.b32.xlu1 %v125_v50, %s318_s1 }
  0x41   :  { %150 = vrot.lane.b32.xlu0 %v124_v52, %s318_s1 }
  0x44   :  { %156 = vrot.lane.b32.xlu1 %v127_v58, %s318_s1 }
  0x45   :  { %154 = vrot.lane.b32.xlu0 %v126_v60, %s318_s1 }
  0x48   :  { %160 = vrot.lane.b32.xlu1 %v129_v0, %s318_s1 }
  0x49   :  { %158 = vrot.lane.b32.xlu0 %v128_v1, %s318_s1 }
  0x4c   :  { %164 = vrot.lane.b32.xlu1 %v131_v4, %s318_s1 }
  0x4d   :  { %162 = vrot.lane.b32.xlu0 %v130_v5, %s318_s1 }
  0xa2   :  { %v139_v6 = vpop.permute.xlu1 %138 }
  0xa3   :  { %168 = vst [vmem:[#allocation7 + $0x10] sm:$0xff] %v139_v6  ;;  %v135_v7 = vpop.permute.xlu0 %134 }
  0xa4   :  { %166 = vst [vmem:[#allocation7] sm:$0xff] %v135_v7 }
  0xa6   :  { %v141_v10 = vpop.permute.xlu1 %140 }
  0xa7   :  { %169 = vst [vmem:[#allocation7 + $0x18] sm:$0xff] %v141_v10  ;;  %v137_v11 = vpop.permute.xlu0 %136 }
  0xa8   :  { %167 = vst [vmem:[#allocation7 + $0x8] sm:$0xff] %v137_v11 }
  0xaa   :  { %v145_v8 = vpop.permute.xlu1 %144 }
  0xab   :  { %171 = vst [vmem:[#allocation7 + $0x28] sm:$0xff] %v145_v8  ;;  %v143_v12 = vpop.permute.xlu0 %142 }
  0xac   :  { %170 = vst [vmem:[#allocation7 + $0x20] sm:$0xff] %v143_v12 }
  0xae   :  { %v149_v13 = vpop.permute.xlu1 %148 }
  0xaf   :  { %173 = vst [vmem:[#allocation7 + $0x38] sm:$0xff] %v149_v13  ;;  %v147_v14 = vpop.permute.xlu0 %146 }
  0xb0   :  { %172 = vst [vmem:[#allocation7 + $0x30] sm:$0xff] %v147_v14 }
  0xb2   :  { %v153_v9 = vpop.permute.xlu1 %152 }
  0xb3   :  { %175 = vst [vmem:[#allocation7 + $0x48] sm:$0xff] %v153_v9  ;;  %v151_v15 = vpop.permute.xlu0 %150 }
  0xb4   :  { %174 = vst [vmem:[#allocation7 + $0x40] sm:$0xff] %v151_v15 }
  0xb6   :  { %v157_v16 = vpop.permute.xlu1 %156 }
  0xb7   :  { %177 = vst [vmem:[#allocation7 + $0x58] sm:$0xff] %v157_v16  ;;  %v155_v17 = vpop.permute.xlu0 %154 }
  0xb8   :  { %176 = vst [vmem:[#allocation7 + $0x50] sm:$0xff] %v155_v17 }
  0xba   :  { %v161_v18 = vpop.permute.xlu1 %160 }
  0xbb   :  { %179 = vst [vmem:[#allocation7 + $0x68] sm:$0xff] %v161_v18  ;;  %v159_v19 = vpop.permute.xlu0 %158 }
  0xbc   :  { %178 = vst [vmem:[#allocation7 + $0x60] sm:$0xff] %v159_v19 }
  0xbe   :  { %v165_v20 = vpop.permute.xlu1 %164 }
  0xbf   :  { %181 = vst [vmem:[#allocation7 + $0x78] sm:$0xff] %v165_v20  ;;  %v163_v21 = vpop.permute.xlu0 %162 }
  0xc0   :  { %180 = vst [vmem:[#allocation7 + $0x70] sm:$0xff] %v163_v21 }
  0xc1   :  { %251 = shalt.err (!%p248_p3)
}
  0xc2   :  { %s252_s11 = scalar_lea.hbm %s430_s2, 2048 }
  0xc3   :  { %p253_p4 = scmp.ne.s32.totalorder %s430_s2, %s252_s11  ;;  %p256_p5 = scmp.lt.u32.totalorder %s252_s11, %s430_s2 }
  0xc5   :  { %p258_p6 = pnand %p256_p5, %p253_p4 }
  0xc7   :  { %261 = shalt.err (!%p258_p6)
}
  0xc8   :  { %193 = dma.vmem_to_hbm [thread:$0]  %s188_s7, 2048, %s430_s2, [#allocation4], %s270_s23, %s270_s23, %s271_s24  }
  0xc9   :  { %266 = dma.done.wait [#allocation4], 2048  }
  0xca   :  { %267 = vsyncadd [#allocation4], 4294965248 }
  0xcb   :  { %197 = vsyncpa [#allocation3], 1 }
  0xcc   :  { %198 = vsyncpa [#allocation4], 1 }
  0xcd   :  { %199 = vsyncpa [#allocation5], 1 }

</bundles_post_ra>
